<compile_context>
chip_gen: v7x
topology: tpu7x:2x2x1
jax: 0.10.0
libtpu: 0.0.40
codegen_flags: <defaults>
</compile_context>

<pallas_src>
import functools

import jax
import jax.numpy as jnp
from jax import lax
from jax.experimental import pallas as pl
from jax.experimental.pallas import tpu as pltpu


# Non-zero taps of the 3x3 'B' mask (ky, kx):
#   mask[:, :, 1, 2:] = 0  (center row: only cols 0,1 kept)
#   mask[:, :, 2:, :] = 0  (rows below center removed)
ALLOWED_TAPS = ((0, 0), (0, 1), (0, 2), (1, 0), (1, 1))

MAX_BATCH_BLOCK = 32
ACT_BLOCK_BUDGET_BYTES = 8 * 1024 * 1024   # in+out blocks, double-buffered


def _pick_batch_block(n, c2, hw):
    """Images per grid step.

    As large as the activation VMEM budget allows (counting in+out blocks,
    double buffered), capped at MAX_BATCH_BLOCK, and capped at ceil(n/2) so
    that for n >= 2 there are always >= 2 grid steps (v7x has 2 TensorCores).
    """
    if n <= 1:
        return 1
    per_image = c2 * hw * 4                                   # f32 bytes
    cap = max(1, ACT_BLOCK_BUDGET_BYTES // (4 * per_image))   # 2 bufs x (in+out)
    cap = min(cap, MAX_BATCH_BLOCK)
    return max(1, min(cap, -(-n // 2)))


def _residual_block_kernel(x_ref, m_ref, w1_ref, b1_ref, w2_ref, b2_ref,
                           w3_ref, b3_ref, o_ref, *, W):
    """One grid step = B_blk images, channel-major (C, HW), HW on lanes.

    x_ref : (B_blk, C2, HW) f32   input block (lane-dense pixel axis)
    m_ref : (8, HW) f32           per-pixel {0,1} validity masks (rows 0..3)
    w1_ref: (HP, C2)              1x1 conv 2h->h  (out, in), out padded to HP
    w2_ref: (HP, 5*HP)            masked 3x3 conv, 5 allowed taps stacked on K
    w3_ref: (C2, HP)              1x1 conv h->2h  (out, in), in padded to HP
    b*_ref: (HP, 1) / (C2, 1) f32 biases (padded lanes are zero)
    o_ref : (B_blk, C2, HW) f32   output block
    """
    B = x_ref.shape[0]
    cdt = w1_ref.dtype                        # matmul operand dtype

    # Loop-invariant loads, hoisted out of the per-image loop.
    w1 = w1_ref[...]
    w2 = w2_ref[...]
    w3 = w3_ref[...]
    b1 = b1_ref[...]
    b2 = b2_ref[...]
    b3 = b3_ref[...]
    m00 = m_ref[0:1, :]     # row >= 1 and col >= 1       tap (ky=0, kx=0)
    m01 = m_ref[1:2, :]     # row >= 1                    tap (ky=0, kx=1)
    m02 = m_ref[2:3, :]     # row >= 1 and col <  W - 1   tap (ky=0, kx=2)
    m10 = m_ref[3:4, :]     # col >= 1                    tap (ky=1, kx=0)

    def process(b, carry):
        x = x_ref[b]                                        # (C2, HW) f32
        h1 = jnp.maximum(x, 0.0)

        # ReLU -> 1x1 conv (2h -> h) -> bias -> ReLU
        y = jnp.dot(w1, h1.astype(cdt), preferred_element_type=jnp.float32)
        y = jnp.maximum(y + b1, 0.0)                        # (HP, HW) f32

        # Masked 3x3 'B' conv (padding=1): the 5 allowed taps are lane rolls
        # of the pixel axis, fused into one K = 5*HP matmul.  Every allowed
        # tap has a NON-POSITIVE pixel offset, so every wrapped-around lane of
        # the circular roll is killed by the row/col validity masks.
        y_cat = jnp.concatenate([
            m00 * pltpu.roll(y, W + 1, axis=1),             # (ky=0, kx=0)
            m01 * pltpu.roll(y, W,     axis=1),             # (ky=0, kx=1)
            m02 * pltpu.roll(y, W - 1, axis=1),             # (ky=0, kx=2)
            m10 * pltpu.roll(y, 1,     axis=1),             # (ky=1, kx=0)
            y,                                              # (ky=1, kx=1)
        ], axis=0)                                          # (5*HP, HW)
        acc = jnp.dot(w2, y_cat.astype(cdt),
                      preferred_element_type=jnp.float32)   # (HP, HW) f32

        # bias -> ReLU -> 1x1 conv (h -> 2h) -> bias -> residual add
        y2 = jnp.maximum(acc + b2, 0.0)
        y3 = jnp.dot(w3, y2.astype(cdt), preferred_element_type=jnp.float32)
        o_ref[b] = x + y3 + b3                              # (C2, HW) f32
        return carry

    if B == 1:
        process(0, 0)
    else:
        # fori_loop (not a Python for) bounds live ranges across images.
        lax.fori_loop(0, B, process, 0, unroll=B <= 4)


@functools.partial(jax.jit, static_argnames=("compute_dtype",))
def residual_block(x_nchw, torch_params, compute_dtype=jnp.bfloat16):
    """x_nchw: (N, 2h, H, W) float32.  Returns (N, 2h, H, W) float32.

    torch_params = (w1 (h,2h), b1 (h,), w2_masked (h,h,3,3), b2 (h,),
                    w3 (2h,h), b3 (2h,)) — the PyTorch-layout parameters.
    compute_dtype: dtype of the matmul operands (accumulation is always f32).
    """
    w1, b1, w2m, b2, w3, b3 = torch_params
    N, C2, H, W = x_nchw.shape
    h = C2 // 2
    HW = H * W
    HP = -(-h // 8) * 8                       # sublane-aligned hidden width
    cdt = compute_dtype

    # The roll-and-mask construction is only valid because every allowed
    # 'B'-mask tap has a non-positive flattened pixel offset.
    assert all((ky - 1) * W + (kx - 1) <= 0 for ky, kx in ALLOWED_TAPS)

    # --- weight packing (channel-major: out = W @ x; tiny arrays) -----------
    w1p = jnp.pad(w1, ((0, HP - h), (0, 0))).astype(cdt)              # (HP, C2)
    w2p = jnp.concatenate(
        [jnp.pad(w2m[:, :, ky, kx], ((0, HP - h), (0, HP - h)))
         for ky, kx in ALLOWED_TAPS], axis=1).astype(cdt)             # (HP,5HP)
    w3p = jnp.pad(w3, ((0, 0), (0, HP - h))).astype(cdt)              # (C2, HP)
    b1p = jnp.pad(b1, (0, HP - h)).reshape(HP, 1)
    b2p = jnp.pad(b2, (0, HP - h)).reshape(HP, 1)
    b3p = b3.reshape(C2, 1)

    # --- per-pixel validity masks, computed once, lane-dense (., HW) --------
    pix = jnp.arange(HW, dtype=jnp.int32)
    row_ge1 = pix >= W
    col = pix % W
    col_ge1 = col >= 1
    col_ltm = col < (W - 1)
    masks = jnp.stack(
        [row_ge1 & col_ge1, row_ge1, row_ge1 & col_ltm, col_ge1],
        axis=0).astype(jnp.float32)
    masks = jnp.pad(masks, ((0, 4), (0, 0)))                          # (8, HW)

    # NCHW -> (N, C2, HW): channel-major, a FREE reshape (no HBM transpose).
    x_flat = x_nchw.reshape(N, C2, HW)

    B_blk = _pick_batch_block(N, C2, HW)
    N_pad = -(-N // B_blk) * B_blk
    if N_pad != N:
        x_flat = jnp.pad(x_flat, ((0, N_pad - N), (0, 0), (0, 0)))

    kernel = functools.partial(_residual_block_kernel, W=W)
    out = pl.pallas_call(
        kernel,
        out_shape=jax.ShapeDtypeStruct((N_pad, C2, HW), jnp.float32),
        grid_spec=pltpu.PrefetchScalarGridSpec(
            num_scalar_prefetch=0,
            grid=(N_pad // B_blk,),
            in_specs=[
                pl.BlockSpec((B_blk, C2, HW), lambda n: (n, 0, 0)),
                pl.BlockSpec((8, HW), lambda n: (0, 0)),
                pl.BlockSpec((HP, C2), lambda n: (0, 0)),
                pl.BlockSpec((HP, 1), lambda n: (0, 0)),
                pl.BlockSpec((HP, 5 * HP), lambda n: (0, 0)),
                pl.BlockSpec((HP, 1), lambda n: (0, 0)),
                pl.BlockSpec((C2, HP), lambda n: (0, 0)),
                pl.BlockSpec((C2, 1), lambda n: (0, 0)),
            ],
            out_specs=pl.BlockSpec((B_blk, C2, HW), lambda n: (n, 0, 0)),
        ),
        compiler_params=pltpu.CompilerParams(
            dimension_semantics=("parallel",),
            vmem_limit_bytes=32 * 1024 * 1024),
    )(x_flat, masks, w1p, b1p, w2p, b2p, w3p, b3p)

    if N_pad != N:
        out = out[:N]
    return out.reshape(N, C2, H, W)


def init_params(key, h):
    """Deterministic parameters mirroring the torch module's shapes.

    Conv2d(2h, h, 1x1), MaskedConvolution(h, h, 3x3, 'B', pad=1),
    Conv2d(h, 2h, 1x1).  Weights: kaiming-normal-style; biases: small uniform.
    The 'B' mask is applied to the 3x3 weight once (same effect as masking
    every forward).
    """
    k1, k2, k3, kb1, kb2, kb3 = jax.random.split(key, 6)
    w1 = jax.random.normal(k1, (h, 2 * h), jnp.float32) * jnp.sqrt(2.0 / (2 * h))
    b1 = jax.random.uniform(kb1, (h,), jnp.float32, -1.0, 1.0) / jnp.sqrt(2.0 * h)
    w2 = jax.random.normal(k2, (h, h, 3, 3), jnp.float32) * jnp.sqrt(2.0 / (9 * h))
    b2 = jax.random.uniform(kb2, (h,), jnp.float32, -1.0, 1.0) / jnp.sqrt(9.0 * h)
    w3 = jax.random.normal(k3, (2 * h, h), jnp.float32) * jnp.sqrt(2.0 / h)
    b3 = jax.random.uniform(kb3, (2 * h,), jnp.float32, -1.0, 1.0) / jnp.sqrt(1.0 * h)

    mask = jnp.ones((3, 3), jnp.float32)
    mask = mask.at[1, 2:].set(0.0).at[2:, :].set(0.0)
    w2_masked = w2 * mask[None, None, :, :]

    return (w1, b1, w2_masked, b2, w3, b3)


def reference(x, torch_params):
    """Pure-JAX reference (NCHW convs), mirrors the PyTorch forward exactly."""
    w1, b1, w2m, b2, w3, b3 = torch_params
    dn = ('NCHW', 'OIHW', 'NCHW')
    y = jax.nn.relu(x)
    y = lax.conv_general_dilated(y, w1[:, :, None, None], (1, 1), 'VALID',
                                 dimension_numbers=dn) + b1[None, :, None, None]
    y = jax.nn.relu(y)
    y = lax.conv_general_dilated(y, w2m, (1, 1), ((1, 1), (1, 1)),
                                 dimension_numbers=dn) + b2[None, :, None, None]
    y = jax.nn.relu(y)
    y = lax.conv_general_dilated(y, w3[:, :, None, None], (1, 1), 'VALID',
                                 dimension_numbers=dn) + b3[None, :, None, None]
    return x + y


if __name__ == "__main__":
    N, h, H, W = 2, 4, 16, 16          # x: (N, 2h, H, W) = (2, 8, 16, 16)
    key = jax.random.PRNGKey(0)
    kx, kp = jax.random.split(key)
    x = jax.random.normal(kx, (N, 2 * h, H, W), jnp.float32)

    torch_params = init_params(kp, h)
    ref = jax.block_until_ready(reference(x, torch_params))

    # f32 matmul operands: tight correctness check.
    out_f32 = jax.block_until_ready(
        residual_block(x, torch_params, compute_dtype=jnp.float32))
    assert out_f32.shape == x.shape and out_f32.dtype == x.dtype
    assert jnp.allclose(out_f32, ref, atol=5e-4, rtol=5e-4), (
        float(jnp.max(jnp.abs(out_f32 - ref))))

    # bf16 matmul operands (default perf path): looser, bf16-appropriate check.
    out_bf16 = jax.block_until_ready(residual_block(x, torch_params))
    assert out_bf16.shape == x.shape and out_bf16.dtype == x.dtype
    assert jnp.allclose(out_bf16, ref, atol=1e-1, rtol=5e-2), (
        float(jnp.max(jnp.abs(out_bf16 - ref))))

    print("KERNEL_OK")
</pallas_src>

<mosaic_0001>
module attributes {stable_mosaic.version = 11 : i64} {
  func.func @_residual_block_kernel(%arg0: i32, %arg1: memref<1x8x256xf32, #tpu.memory_space<vmem>>, %arg2: memref<8x256xf32, #tpu.memory_space<vmem>>, %arg3: memref<8x8xf32, #tpu.memory_space<vmem>>, %arg4: memref<8x1xf32, #tpu.memory_space<vmem>>, %arg5: memref<8x40xf32, #tpu.memory_space<vmem>>, %arg6: memref<8x1xf32, #tpu.memory_space<vmem>>, %arg7: memref<8x8xf32, #tpu.memory_space<vmem>>, %arg8: memref<8x1xf32, #tpu.memory_space<vmem>>, %arg9: memref<1x8x256xf32, #tpu.memory_space<vmem>>) attributes {dimension_semantics = [#tpu.dimension_semantics<parallel>], iteration_bounds = array<i64: 2>, scalar_prefetch = 0 : i64, scratch_operands = 0 : i64, tpu.core_type = #tpu.core_type<tc>, window_params = [{transform_indices = @transform_0, window_bounds = array<i64: 1, 8, 256>}, {pipeline_mode = #tpu.pipeline_mode<synchronous>, transform_indices = @transform_1, window_bounds = array<i64: 8, 256>}, {pipeline_mode = #tpu.pipeline_mode<synchronous>, transform_indices = @transform_2, window_bounds = array<i64: 8, 8>}, {pipeline_mode = #tpu.pipeline_mode<synchronous>, transform_indices = @transform_3, window_bounds = array<i64: 8, 1>}, {pipeline_mode = #tpu.pipeline_mode<synchronous>, transform_indices = @transform_4, window_bounds = array<i64: 8, 40>}, {pipeline_mode = #tpu.pipeline_mode<synchronous>, transform_indices = @transform_5, window_bounds = array<i64: 8, 1>}, {pipeline_mode = #tpu.pipeline_mode<synchronous>, transform_indices = @transform_6, window_bounds = array<i64: 8, 8>}, {pipeline_mode = #tpu.pipeline_mode<synchronous>, transform_indices = @transform_7, window_bounds = array<i64: 8, 1>}, {transform_indices = @transform_8, window_bounds = array<i64: 1, 8, 256>}]} {
    %c0 = arith.constant 0 : index
    %c0_0 = arith.constant 0 : index
    %0 = vector.load %arg3[%c0, %c0_0] : memref<8x8xf32, #tpu.memory_space<vmem>>, vector<8x8xf32>
    %c0_1 = arith.constant 0 : index
    %c0_2 = arith.constant 0 : index
    %1 = vector.load %arg5[%c0_1, %c0_2] : memref<8x40xf32, #tpu.memory_space<vmem>>, vector<8x40xf32>
    %c0_3 = arith.constant 0 : index
    %c0_4 = arith.constant 0 : index
    %2 = vector.load %arg7[%c0_3, %c0_4] : memref<8x8xf32, #tpu.memory_space<vmem>>, vector<8x8xf32>
    %c0_5 = arith.constant 0 : index
    %c0_6 = arith.constant 0 : index
    %3 = vector.load %arg4[%c0_5, %c0_6] : memref<8x1xf32, #tpu.memory_space<vmem>>, vector<8x1xf32>
    %c0_7 = arith.constant 0 : index
    %c0_8 = arith.constant 0 : index
    %4 = vector.load %arg6[%c0_7, %c0_8] : memref<8x1xf32, #tpu.memory_space<vmem>>, vector<8x1xf32>
    %c0_9 = arith.constant 0 : index
    %c0_10 = arith.constant 0 : index
    %5 = vector.load %arg8[%c0_9, %c0_10] : memref<8x1xf32, #tpu.memory_space<vmem>>, vector<8x1xf32>
    %c0_11 = arith.constant 0 : index
    %c0_12 = arith.constant 0 : index
    %6 = vector.load %arg2[%c0_11, %c0_12] : memref<8x256xf32, #tpu.memory_space<vmem>>, vector<1x256xf32>
    %c1 = arith.constant 1 : index
    %c0_13 = arith.constant 0 : index
    %7 = vector.load %arg2[%c1, %c0_13] : memref<8x256xf32, #tpu.memory_space<vmem>>, vector<1x256xf32>
    %c2 = arith.constant 2 : index
    %c0_14 = arith.constant 0 : index
    %8 = vector.load %arg2[%c2, %c0_14] : memref<8x256xf32, #tpu.memory_space<vmem>>, vector<1x256xf32>
    %c3 = arith.constant 3 : index
    %c0_15 = arith.constant 0 : index
    %9 = vector.load %arg2[%c3, %c0_15] : memref<8x256xf32, #tpu.memory_space<vmem>>, vector<1x256xf32>
    %c0_16 = arith.constant 0 : index
    %c0_17 = arith.constant 0 : index
    %c0_18 = arith.constant 0 : index
    %10 = vector.load %arg1[%c0_16, %c0_17, %c0_18] : memref<1x8x256xf32, #tpu.memory_space<vmem>>, vector<1x8x256xf32>
    %11 = vector.shape_cast %10 : vector<1x8x256xf32> to vector<8x256xf32>
    %cst = arith.constant 0.000000e+00 : f32
    %12 = vector.broadcast %cst : f32 to vector<8x256xf32>
    %13 = arith.maximumf %11, %12 : vector<8x256xf32>
    %cst_19 = arith.constant dense<0.000000e+00> : vector<8x256xf32>
    %14 = tpu.matmul %0, %13, %cst_19 {dimension_numbers = #tpu.dot_dimension_numbers<[1], [0], [0], [1], [0, 0, 1, 1], [], []>} : vector<8x8xf32>, vector<8x256xf32>, vector<8x256xf32> -> vector<8x256xf32>
    %15 = vector.broadcast %3 : vector<8x1xf32> to vector<8x256xf32>
    %16 = arith.addf %14, %15 : vector<8x256xf32>
    %cst_20 = arith.constant 0.000000e+00 : f32
    %17 = vector.broadcast %cst_20 : f32 to vector<8x256xf32>
    %18 = arith.maximumf %16, %17 : vector<8x256xf32>
    %c17_i32 = arith.constant 17 : i32
    %19 = tpu.dynamic_rotate %18 by %c17_i32 dim 1 : vector<8x256xf32>, i32 -> vector<8x256xf32>
    %20 = vector.broadcast %6 : vector<1x256xf32> to vector<8x256xf32>
    %21 = arith.mulf %20, %19 : vector<8x256xf32>
    %c16_i32 = arith.constant 16 : i32
    %22 = tpu.dynamic_rotate %18 by %c16_i32 dim 1 : vector<8x256xf32>, i32 -> vector<8x256xf32>
    %23 = vector.broadcast %7 : vector<1x256xf32> to vector<8x256xf32>
    %24 = arith.mulf %23, %22 : vector<8x256xf32>
    %c15_i32 = arith.constant 15 : i32
    %25 = tpu.dynamic_rotate %18 by %c15_i32 dim 1 : vector<8x256xf32>, i32 -> vector<8x256xf32>
    %26 = vector.broadcast %8 : vector<1x256xf32> to vector<8x256xf32>
    %27 = arith.mulf %26, %25 : vector<8x256xf32>
    %c1_i32 = arith.constant 1 : i32
    %28 = tpu.dynamic_rotate %18 by %c1_i32 dim 1 : vector<8x256xf32>, i32 -> vector<8x256xf32>
    %29 = vector.broadcast %9 : vector<1x256xf32> to vector<8x256xf32>
    %30 = arith.mulf %29, %28 : vector<8x256xf32>
    %31 = tpu.concatenate %21, %24, %27, %30, %18 in 0 : vector<8x256xf32>, vector<8x256xf32>, vector<8x256xf32>, vector<8x256xf32>, vector<8x256xf32> -> vector<40x256xf32>
    %cst_21 = arith.constant dense<0.000000e+00> : vector<8x256xf32>
    %32 = tpu.matmul %1, %31, %cst_21 {dimension_numbers = #tpu.dot_dimension_numbers<[1], [0], [0], [1], [0, 0, 1, 1], [], []>} : vector<8x40xf32>, vector<40x256xf32>, vector<8x256xf32> -> vector<8x256xf32>
    %33 = vector.broadcast %4 : vector<8x1xf32> to vector<8x256xf32>
    %34 = arith.addf %32, %33 : vector<8x256xf32>
    %cst_22 = arith.constant 0.000000e+00 : f32
    %35 = vector.broadcast %cst_22 : f32 to vector<8x256xf32>
    %36 = arith.maximumf %34, %35 : vector<8x256xf32>
    %cst_23 = arith.constant dense<0.000000e+00> : vector<8x256xf32>
    %37 = tpu.matmul %2, %36, %cst_23 {dimension_numbers = #tpu.dot_dimension_numbers<[1], [0], [0], [1], [0, 0, 1, 1], [], []>} : vector<8x8xf32>, vector<8x256xf32>, vector<8x256xf32> -> vector<8x256xf32>
    %38 = arith.addf %11, %37 : vector<8x256xf32>
    %39 = vector.broadcast %5 : vector<8x1xf32> to vector<8x256xf32>
    %40 = arith.addf %38, %39 : vector<8x256xf32>
    %c0_24 = arith.constant 0 : index
    %c0_25 = arith.constant 0 : index
    %c0_26 = arith.constant 0 : index
    %41 = vector.load %arg9[%c0_24, %c0_25, %c0_26] : memref<1x8x256xf32, #tpu.memory_space<vmem>>, vector<1x8x256xf32>
    %42 = vector.shape_cast %41 : vector<1x8x256xf32> to vector<8x256xf32>
    %43 = vector.shape_cast %40 : vector<8x256xf32> to vector<1x8x256xf32>
    tpu.vector_store %arg9[%c0_24, %c0_25, %c0_26], %43 {strides = array<i32>} : memref<1x8x256xf32, #tpu.memory_space<vmem>>, vector<1x8x256xf32>,
    return
  }
  func.func @transform_0(%arg0: i32) -> (i32, i32, i32) {
    %c0_i32 = arith.constant 0 : i32
    %c0_i32_0 = arith.constant 0 : i32
    %c0_i32_1 = arith.constant 0 : i32
    return %arg0, %c0_i32, %c0_i32_0 : i32, i32, i32
  }
  func.func @transform_1(%arg0: i32) -> (i32, i32) {
    %c0_i32 = arith.constant 0 : i32
    %c0_i32_0 = arith.constant 0 : i32
    %c0_i32_1 = arith.constant 0 : i32
    return %c0_i32, %c0_i32_0 : i32, i32
  }
  func.func @transform_2(%arg0: i32) -> (i32, i32) {
    %c0_i32 = arith.constant 0 : i32
    %c0_i32_0 = arith.constant 0 : i32
    %c0_i32_1 = arith.constant 0 : i32
    return %c0_i32, %c0_i32_0 : i32, i32
  }
  func.func @transform_3(%arg0: i32) -> (i32, i32) {
    %c0_i32 = arith.constant 0 : i32
    %c0_i32_0 = arith.constant 0 : i32
    %c0_i32_1 = arith.constant 0 : i32
    return %c0_i32, %c0_i32_0 : i32, i32
  }
  func.func @transform_4(%arg0: i32) -> (i32, i32) {
    %c0_i32 = arith.constant 0 : i32
    %c0_i32_0 = arith.constant 0 : i32
    %c0_i32_1 = arith.constant 0 : i32
    return %c0_i32, %c0_i32_0 : i32, i32
  }
  func.func @transform_5(%arg0: i32) -> (i32, i32) {
    %c0_i32 = arith.constant 0 : i32
    %c0_i32_0 = arith.constant 0 : i32
    %c0_i32_1 = arith.constant 0 : i32
    return %c0_i32, %c0_i32_0 : i32, i32
  }
  func.func @transform_6(%arg0: i32) -> (i32, i32) {
    %c0_i32 = arith.constant 0 : i32
    %c0_i32_0 = arith.constant 0 : i32
    %c0_i32_1 = arith.constant 0 : i32
    return %c0_i32, %c0_i32_0 : i32, i32
  }
  func.func @transform_7(%arg0: i32) -> (i32, i32) {
    %c0_i32 = arith.constant 0 : i32
    %c0_i32_0 = arith.constant 0 : i32
    %c0_i32_1 = arith.constant 0 : i32
    return %c0_i32, %c0_i32_0 : i32, i32
  }
  func.func @transform_8(%arg0: i32) -> (i32, i32, i32) {
    %c0_i32 = arith.constant 0 : i32
    %c0_i32_0 = arith.constant 0 : i32
    %c0_i32_1 = arith.constant 0 : i32
    return %arg0, %c0_i32, %c0_i32_0 : i32, i32, i32
  }
}

</mosaic_0001>

<bundles_post_ra>
// kernel: residual_block.1
= control target key start
LH: loop header
LB: loop body
LE: loop exit
PB: predicated region body
PF: predicated region fallthrough
CT: control target
= control target key end

     0   :  { %s811_s27 = smov 0   ;;  %s891_s0 = inlined_call_operand.vmem [shape: f32[2,8,256], index: 0, kind: input, shape index: {}]   ;;  %s892_s1 = inlined_call_operand.vmem [shape: f32[8,256], index: 1, kind: input, shape index: {}]   ;;  %s893_s2 = inlined_call_operand.vmem [shape: f32[8,8], index: 2, kind: input, shape index: {}]   ;;  %s894_s3 = inlined_call_operand.vmem [shape: f32[8,1], index: 3, kind: input, shape index: {}]   ;;  %s895_s4 = inlined_call_operand.vmem [shape: f32[8,40], index: 4, kind: input, shape index: {}]   ;;  %s896_s5 = inlined_call_operand.vmem [shape: f32[8,1], index: 5, kind: input, shape index: {}]   ;;  %s897_s6 = inlined_call_operand.vmem [shape: f32[8,8], index: 6, kind: input, shape index: {}]   ;;  %s898_s7 = inlined_call_operand.vmem [shape: f32[8,1], index: 7, kind: input, shape index: {}]   ;;  %s899_s8 = inlined_call_operand.vmem [shape: f32[2,8,256], index: 8, kind: output, shape index: {}]  }
   0x1 LB: > { %s709_s28 = sadd.s32 4294967295, %s758_s27   ;;  %p713_p0 = scmp.ge.s32.totalorder %s758_s27, 1  ;;  %s758_s27 = sphi %s811_s27, %s18_s27  }
   0x2   : > { %p262_p1 = scmp.lt.s32.totalorder %s758_s27, 3 }
   0x4   : > { %p263_p2 = pnand %p713_p0, %p262_p1 }
   0x5   : > { %p296_p3 = scmp.lt.s32.totalorder (!%p263_p2), %s709_s28, 1  ;;  %v309_v0 = vld [vmem:[%s894_s3] sm:$0xff] (!%p263_p2)  ;;  %v760_v1 = vmov (!%p263_p2), 0.0   ;;  %v761_v2 = vmov (!%p263_p2), 0   ;;  %vm328_vm0 = vcmask (!%p263_p2), 64512   ;;  %s762_s15 = smov (!%p263_p2), 16   ;;  %v409_v17 = vlaneseq (!%p263_p2) }
   0x6   : > { %266 = sbr.rel (%p263_p2) target bundleno = 812 (0x32c), region = 52  ;;  %396 = vmatprep.mubr.f32.mxu0 (!%p263_p2), %v760_v1  ;;  %750 = vset.pattern.permute.xlu0 (!%p263_p2), %v761_v2  ;;  %v306_v7 = vld [vmem:[%s893_s2] sm:$0xff] (!%p263_p2)  ;;  %s763_s16 = smov (!%p263_p2), 17   ;;  %vm492_vm5 = vcmask (!%p263_p2), 326656  }
   0x7   : > { %325 = vperm.xlu0 (!%p263_p2), %750, %v309_v0   ;;  %560 = vmatprep.mubr.f32.mxu1 (!%p263_p2), %v760_v1  ;;  %s764_s17 = smov (!%p263_p2), 15   ;;  %s765_s18 = smov (!%p263_p2), 1   ;;  %v311_v15 = vld [vmem:[%s898_s7] sm:$0xff] (!%p263_p2)  ;;  %v416_v18 = vshrl.u32 (!%p263_p2), %v409_v17, 7  ;;  %v410_v21 = vand.u32 (!%p263_p2), 127, %v409_v17 }
   0x8   : > { %751 = vset.pattern.permute.xlu1 (!%p263_p2), %v761_v2  ;;  %v310_v16 = vld [vmem:[%s896_s5] sm:$0xff] (!%p263_p2) }
   0x9   : > { %v417_v22 = vsub.s32 (!%p263_p2), 0, %v416_v18  ;;  %v718_v23 = vld [vmem:[%s892_s1 + $0x1] ss:$8 sm:$0x3] (!%p263_p2)  ;;  %v421_v24 = vsub.s32 (!%p263_p2), 1, %v416_v18  ;;  %vm431_vm1 = vcmp.lt.s32.totalorder (!%p263_p2), %v410_v21, 16 }
   0xa   : > { %v312_v25 = vld [vmem:[%s892_s1] ss:$8 sm:$0x3] (!%p263_p2)  ;;  %v719_v29 = vld [vmem:[%s892_s1 + $0x2] ss:$8 sm:$0x3] (!%p263_p2) }
   0xb   : > { %v438_v28 = vrot.slane (!%p263_p2), %v718_v23, %v417_v22  ;;  %vm411_vm2 = vcmp.lt.s32.totalorder (!%p263_p2), %v410_v21, 17  ;;  %v418_v30 = vrot.slane (!%p263_p2), %v312_v25, %v417_v22  ;;  %v720_v31 = vld [vmem:[%s892_s1 + $0x3] ss:$8 sm:$0x3] (!%p263_p2)  ;;  %v422_v32 = vrot.slane (!%p263_p2), %v312_v25, %v421_v24 }
   0xc   : > { %v442_v33 = vrot.slane (!%p263_p2), %v718_v23, %v421_v24  ;;  %vm451_vm3 = vcmp.lt.s32.totalorder (!%p263_p2), %v410_v21, 15  ;;  %v458_v37 = vrot.slane (!%p263_p2), %v719_v29, %v417_v22  ;;  %v462_v38 = vrot.slane (!%p263_p2), %v719_v29, %v421_v24  ;;  %v307_v62 = vld [vmem:[%s895_s4] sm:$0xff] (!%p263_p2) }
   0xd   : > { %s901_s28 = smov (!%p296_p3, %s709_s28), 1  ;;  %vm471_vm4 = vcmp.lt.s32.totalorder %v410_v21, 1  ;;  %v478_v42 = vrot.slane %v720_v31, %v417_v22  ;;  %v482_v43 = vrot.slane %v720_v31, %v421_v24 }
   0xe   : > { %s726_s9 = sshll.u32 %s901_s28, 4 }
   0xf   : > { %s300_s12 = scalar_lea.vmem %s891_s0, %s726_s9 }
  0x10   : > { %v830_v3 = vld [vmem:[%s300_s12 + $0x8] sm:$0xff]  ;;  %v832_v4 = vld [vmem:[%s300_s12] sm:$0xff] }
  0x11   : > { %v322_v5 = vmax.f32 %v830_v3, 0.0  ;;  %v321_v6 = vmax.f32 %v832_v4, 0.0 }
  0x13   : > { %332 = vmatprep.subr.mxu0 %v322_v5 }
  0x14   : > { %333 = vmatpush1.msra.mxu0 %v321_v6 }
  0x15   : > { %721 = vmatmul.mubr.msk.f32.vlgmr.msra.gmra.mrb[0].mxu0 %vm328_vm0, %v306_v7 }
  0x16   : > { %636 = vmatprep.mubr.f32.mxu0 %v760_v1 }
  0x86   : > { %v326_v8 = vpop.permute.xlu0 %325 }
  0xe8   : > { %v398_v9 = vpop.f32.mrb[0].mxu0 }
  0xe9   : > { %v399_v10 = vadd.f32 %v398_v9, %v326_v8  ;;  %v400_v11 = vpop.f32.mrb[1].mxu0 }
  0xea   : > { %v401_v13 = vadd.f32 %v400_v11, %v326_v8  ;;  %v308_v8 = vld [vmem:[%s897_s6] sm:$0xff] }
  0xeb   : > { %v840_v12 = vmax.f32 %v399_v10, 0.0 }
  0xec   : > { %v844_v14 = vmax.f32 %v401_v13, 0.0 }
  0xed   : > { %427 = vrot.lane.b32.xlu1 %v840_v12, %s762_s15  ;;  %405 = vrot.lane.b32.xlu0 %v840_v12, %s763_s16 }
  0xf1   : > { %447 = vrot.lane.b32.xlu1 %v840_v12, %s764_s17  ;;  %429 = vrot.lane.b32.xlu0 %v844_v14, %s762_s15 }
  0xf5   : > { %407 = vrot.lane.b32.xlu1 %v844_v14, %s763_s16  ;;  %449 = vrot.lane.b32.xlu0 %v844_v14, %s764_s17 }
  0xf9   : > { %467 = vrot.lane.b32.xlu1 %v840_v12, %s765_s18  ;;  %469 = vrot.lane.b32.xlu0 %v844_v14, %s765_s18  ;;  %s305_s18 = scalar_lea.vmem %s899_s8, %s726_s9 }
  0xfd   : > { %647 = vperm.xlu0 %750, %v311_v15   ;;  %489 = vperm.xlu1 %751, %v310_v16  }
 0x15f   : > { %v428_v19 = vpop.permute.xlu1 %427  ;;  %v406_v20 = vpop.permute.xlu0 %405 }
 0x163   : > { %v448_v26 = vpop.permute.xlu1 %447  ;;  %v430_v27 = vpop.permute.xlu0 %429 }
 0x164   : > { %v432_v34 = vsel %vm431_vm1, %v428_v19, %v430_v27  ;;  %v433_v35 = vsel %vm431_vm1, %v430_v27, %v428_v19 }
 0x165   : > { %v445_v44 = vmul.f32 %v438_v28, %v433_v35  ;;  %v446_v47 = vmul.f32 %v442_v33, %v432_v34 }
 0x167   : > { %v408_v36 = vpop.permute.xlu1 %407  ;;  %v450_v39 = vpop.permute.xlu0 %449 }
 0x168   : > { %v412_v40 = vsel %vm411_vm2, %v406_v20, %v408_v36  ;;  %v413_v41 = vsel %vm411_vm2, %v408_v36, %v406_v20  ;;  %v452_v48 = vsel %vm451_vm3, %v448_v26, %v450_v39  ;;  %v453_v49 = vsel %vm451_vm3, %v450_v39, %v448_v26 }
 0x169   : > { %v425_v45 = vmul.f32 %v418_v30, %v413_v41  ;;  %v426_v46 = vmul.f32 %v422_v32, %v412_v40  ;;  %v465_v56 = vmul.f32 %v458_v37, %v453_v49  ;;  %v466_v57 = vmul.f32 %v462_v38, %v452_v48 }
 0x16b   : > { %v468_v50 = vpop.permute.xlu1 %467  ;;  %v470_v51 = vpop.permute.xlu0 %469  ;;  %v728_v52 = vpack.c.bf16 %v446_v47, %v426_v46  ;;  %v730_v53 = vpack.c.bf16 %v445_v44, %v425_v45 }
 0x16c   : > { %v472_v54 = vsel %vm471_vm4, %v468_v50, %v470_v51  ;;  %v473_v55 = vsel %vm471_vm4, %v470_v51, %v468_v50 }
 0x16d   : > { %v485_v58 = vmul.f32 %v478_v42, %v473_v55  ;;  %v486_v59 = vmul.f32 %v482_v43, %v472_v54  ;;  %729 = vmatprep.subr.bf16.mxu1 %v728_v52 }
 0x16e   : > { %731 = vmatpush1.bf16.msra.mxu1 %v730_v53 }
 0x16f   : > { %v732_v60 = vpack.c.bf16 %v486_v59, %v466_v57  ;;  %v734_v61 = vpack.c.bf16 %v485_v58, %v465_v56 }
 0x171   : > { %733 = vmatprep.subr.bf16.mxu1 %v732_v60 }
 0x172   : > { %735 = vmatpush1.bf16.msra.mxu1 %v734_v61 }
 0x173   : > { %504 = vmatprep.subr.mxu1 %v844_v14 }
 0x176   : > { %505 = vmatpush1.msra.mxu1 %v840_v12 }
 0x177   : > { %722 = vmatmul.mubr.msk.f32.vlgmr.msra.gmra.mrb[0].mxu1 %vm492_vm5, %v307_v62 }
 0x17c   : > { %v490_v63 = vpop.permute.xlu1 %489  ;;  %v648_v12 = vpop.permute.xlu0 %647 }
 0x24a   : > { %v562_v0 = vpop.f32.mrb[0].mxu1 }
 0x24b   : > { %v563_v1 = vadd.f32 %v562_v0, %v490_v63  ;;  %v564_v2 = vpop.f32.mrb[1].mxu1 }
 0x24c   : > { %v565_v5 = vadd.f32 %v564_v2, %v490_v63 }
 0x24d   : > { %v567_v7 = vmax.f32 %v563_v1, 0.0 }
 0x24e   : > { %v568_v6 = vmax.f32 %v565_v5, 0.0 }
 0x250   : > { %572 = vmatprep.subr.mxu0 %v568_v6 }
 0x251   : > { %573 = vmatpush1.msra.mxu0 %v567_v7 }
 0x252   : > { %723 = vmatmul.mubr.msk.f32.vlgmr.msra.gmra.mrb[2].mxu0 %vm328_vm0, %v308_v8 }
 0x325   : > { %v638_v9 = vpop.f32.mrb[2].mxu0 }
 0x326   : > { %v643_v10 = vadd.f32 %v638_v9, %v832_v4  ;;  %v640_v11 = vpop.f32.mrb[3].mxu0 }
 0x327   : > { %v644_v13 = vadd.f32 %v640_v11, %v830_v3 }
 0x328   : > { %v650_v14 = vadd.f32 %v648_v12, %v643_v10 }
 0x329   : > { %v651_v15 = vadd.f32 %v648_v12, %v644_v13 }
 0x32a   : > { %652 = vst [vmem:[%s305_s18] sm:$0xff] %v650_v14 }
 0x32b   : > { %653 = vst [vmem:[%s305_s18 + $0x8] sm:$0xff] %v651_v15 }
 0x32c PF: > { %s18_s27 = sadd.s32 1, %s758_s27  }
 0x32d   : > { %p15_p4 = scmp.ge.s32.totalorder %s18_s27, 4  }
 0x32f   :  { %17 = sbr.rel (!%p15_p4) target bundleno = 1 (0x1), region = 85 }

</bundles_post_ra>
